<compile_context>
chip_gen: v6e
topology: v6e:2x2x1
jax: 0.10.0
libtpu: 0.0.40
codegen_flags: <defaults>
</compile_context>

<pallas_src>
import functools

import jax
import jax.numpy as jnp
from jax.experimental import pallas as pl
from jax.experimental.pallas import tpu as pltpu


def _double_conv_kernel(x_ref, mask_ref, w1_ref, b1_ref, w2_ref, b2_ref, o_ref, *, H, W):
    """One batch element: (conv3x3 + BN-folded bias + ReLU) twice on a (C, HW) slab."""
    HW = H * W
    x = x_ref[0]                                  # (Cin, HW)

    def conv3x3_bias_relu(src, w_ref, b_ref):
        # src: (C, HW); w_ref: (Cout, 9*C) tap-major; b_ref: (Cout, 1).
        taps = []
        k = 0
        for dh in (-1, 0, 1):
            for dw in (-1, 0, 1):
                s = dh * W + dw                   # flat shift for this tap
                if s == 0:
                    taps.append(src)              # center tap: no shift, no mask
                else:
                    # shifted[c, n] = src[c, (n + s) mod HW]; wrapped / out-of-bounds
                    # positions are exactly the masked (zero-padded) ones.
                    shifted = pltpu.roll(src, shift=(-s) % HW, axis=1)
                    taps.append(shifted * mask_ref[k])   # (1, HW) mask, VPU broadcast
                k += 1
        stacked = jnp.concatenate(taps, axis=0)   # (9*C, HW), lives in VMEM only
        acc = jnp.dot(w_ref[...], stacked, preferred_element_type=jnp.float32)
        return jnp.maximum(acc + b_ref[...], 0.0)

    h1 = conv3x3_bias_relu(x, w1_ref, b1_ref)     # (Cout, HW), never leaves VMEM
    out = conv3x3_bias_relu(h1, w2_ref, b2_ref)   # (Cout, HW)
    o_ref[0] = out.astype(o_ref.dtype)


def double_conv_pallas(x, folded_params):
    """x: (B, Cin, H, W) NCHW.  folded_params: (w1t, b1f, w2t, b2f) with BN folded."""
    w1t, b1f, w2t, b2f = folded_params
    B, Cin, H, W = x.shape
    HW = H * W
    Cout = w1t.shape[0]

    # Per-tap boundary masks implementing the 3x3 / pad=1 zero padding.  Tiny
    # (9, 1, HW) f32 array, built once on the host; order matches the kernel tap loop.
    hh = jnp.arange(H, dtype=jnp.int32)[:, None]
    ww = jnp.arange(W, dtype=jnp.int32)[None, :]
    mask_list = []
    for dh in (-1, 0, 1):
        for dw in (-1, 0, 1):
            valid = ((hh + dh >= 0) & (hh + dh < H) &
                     (ww + dw >= 0) & (ww + dw < W))
            mask_list.append(valid.reshape(1, HW))
    masks = jnp.stack(mask_list, axis=0).astype(jnp.float32)   # (9, 1, HW)

    x_flat = x.reshape(B, Cin, HW)   # contiguous reshape, no copy

    kernel = functools.partial(_double_conv_kernel, H=H, W=W)
    out_flat = pl.pallas_call(
        kernel,
        out_shape=jax.ShapeDtypeStruct((B, Cout, HW), x.dtype),
        grid_spec=pltpu.PrefetchScalarGridSpec(
            num_scalar_prefetch=0,
            grid=(B,),
            in_specs=[
                pl.BlockSpec((1, Cin, HW), lambda b: (b, 0, 0)),       # x slab
                pl.BlockSpec((9, 1, HW), lambda b: (0, 0, 0)),         # boundary masks
                pl.BlockSpec((Cout, 9 * Cin), lambda b: (0, 0)),       # conv1 (BN folded)
                pl.BlockSpec((Cout, 1), lambda b: (0, 0)),             # conv1 bias (folded)
                pl.BlockSpec((Cout, 9 * Cout), lambda b: (0, 0)),      # conv2 (BN folded)
                pl.BlockSpec((Cout, 1), lambda b: (0, 0)),             # conv2 bias (folded)
            ],
            out_specs=pl.BlockSpec((1, Cout, HW), lambda b: (b, 0, 0)),
        ),
        compiler_params=pltpu.CompilerParams(
            dimension_semantics=("parallel",)),
    )(x_flat, masks, w1t, b1f, w2t, b2f)
    return out_flat.reshape(B, Cout, H, W)


# ---------------------------------------------------------------------------
# Parameter setup (PyTorch-style raw params) + eval-mode BN folding.
# ---------------------------------------------------------------------------
def init_raw_params(key, in_ch, out_ch):
    ks = jax.random.split(key, 12)

    def conv_bn(k0, k1, k2, k3, k4, k5, cin, cout):
        w = jax.random.normal(k0, (cout, cin, 3, 3), jnp.float32) * 0.2
        b = jax.random.normal(k1, (cout,), jnp.float32) * 0.1
        gamma = 1.0 + 0.1 * jax.random.normal(k2, (cout,), jnp.float32)
        beta = 0.1 * jax.random.normal(k3, (cout,), jnp.float32)
        mean = 0.1 * jax.random.normal(k4, (cout,), jnp.float32)
        var = 0.5 + jax.random.uniform(k5, (cout,), jnp.float32)
        return (w, b, gamma, beta, mean, var)

    p1 = conv_bn(*ks[0:6], in_ch, out_ch)
    p2 = conv_bn(*ks[6:12], out_ch, out_ch)
    return (p1, p2)


def fold_params(raw_params, eps=1e-5):
    def fold_one(p):
        w, b, gamma, beta, mean, var = p
        scale = gamma / jnp.sqrt(var + eps)
        wf = w * scale[:, None, None, None]
        bf = (b - mean) * scale + beta
        cout, cin = w.shape[0], w.shape[1]
        # Tap-major stacked weights (Cout, 9*Cin): column (k*Cin + c) is tap
        # k = (dh+1)*3 + (dw+1), input channel c — matches the kernel's tap-stacked
        # (9*Cin, HW) matrix built via roll+mask+concatenate.
        wt = jnp.transpose(wf, (0, 2, 3, 1)).reshape(cout, 9 * cin)
        return wt, bf.reshape(cout, 1)

    w1t, b1f = fold_one(raw_params[0])
    w2t, b2f = fold_one(raw_params[1])
    return (w1t, b1f, w2t, b2f)


# ---------------------------------------------------------------------------
# Pure-JAX reference of the original module (conv -> eval BN -> ReLU, twice).
# ---------------------------------------------------------------------------
def double_conv_ref(x, raw_params, eps=1e-5):
    def conv_bn_relu(x, p):
        w, b, gamma, beta, mean, var = p
        y = jax.lax.conv_general_dilated(
            x, w, window_strides=(1, 1), padding=((1, 1), (1, 1)),
            dimension_numbers=("NCHW", "OIHW", "NCHW"))
        y = y + b[None, :, None, None]
        y = (gamma[None, :, None, None] * (y - mean[None, :, None, None])
             / jnp.sqrt(var[None, :, None, None] + eps) + beta[None, :, None, None])
        return jnp.maximum(y, 0.0)

    x = conv_bn_relu(x, raw_params[0])
    x = conv_bn_relu(x, raw_params[1])
    return x


if __name__ == "__main__":
    key = jax.random.PRNGKey(0)
    kx, kp = jax.random.split(key)
    B, Cin, Cout, H, W = 2, 3, 8, 16, 16
    x = jax.random.normal(kx, (B, Cin, H, W), jnp.float32)

    raw = init_raw_params(kp, Cin, Cout)
    folded = fold_params(raw)

    out = double_conv_pallas(x, folded)
    out = jax.block_until_ready(out)

    ref = double_conv_ref(x, raw)
    assert out.shape == (B, Cout, H, W)
    assert jnp.allclose(out, ref, rtol=1e-3, atol=1e-3), "Pallas output mismatch vs reference"
    print("KERNEL_OK")
</pallas_src>

<mosaic_0001>
module attributes {stable_mosaic.version = 11 : i64} {
  func.func @_double_conv_kernel(%arg0: i32, %arg1: memref<1x3x256xf32, #tpu.memory_space<vmem>>, %arg2: memref<9x1x256xf32, #tpu.memory_space<vmem>>, %arg3: memref<8x27xf32, #tpu.memory_space<vmem>>, %arg4: memref<8x1xf32, #tpu.memory_space<vmem>>, %arg5: memref<8x72xf32, #tpu.memory_space<vmem>>, %arg6: memref<8x1xf32, #tpu.memory_space<vmem>>, %arg7: memref<1x8x256xf32, #tpu.memory_space<vmem>>) attributes {dimension_semantics = [#tpu.dimension_semantics<parallel>], iteration_bounds = array<i64: 2>, scalar_prefetch = 0 : i64, scratch_operands = 0 : i64, tpu.core_type = #tpu.core_type<tc>, window_params = [{transform_indices = @transform_0, window_bounds = array<i64: 1, 3, 256>}, {pipeline_mode = #tpu.pipeline_mode<synchronous>, transform_indices = @transform_1, window_bounds = array<i64: 9, 1, 256>}, {pipeline_mode = #tpu.pipeline_mode<synchronous>, transform_indices = @transform_2, window_bounds = array<i64: 8, 27>}, {pipeline_mode = #tpu.pipeline_mode<synchronous>, transform_indices = @transform_3, window_bounds = array<i64: 8, 1>}, {pipeline_mode = #tpu.pipeline_mode<synchronous>, transform_indices = @transform_4, window_bounds = array<i64: 8, 72>}, {pipeline_mode = #tpu.pipeline_mode<synchronous>, transform_indices = @transform_5, window_bounds = array<i64: 8, 1>}, {transform_indices = @transform_6, window_bounds = array<i64: 1, 8, 256>}]} {
    %c0 = arith.constant 0 : index
    %c0_0 = arith.constant 0 : index
    %c0_1 = arith.constant 0 : index
    %0 = vector.load %arg1[%c0, %c0_0, %c0_1] : memref<1x3x256xf32, #tpu.memory_space<vmem>>, vector<1x3x256xf32>
    %1 = vector.shape_cast %0 : vector<1x3x256xf32> to vector<3x256xf32>
    %c17_i32 = arith.constant 17 : i32
    %2 = tpu.dynamic_rotate %1 by %c17_i32 dim 1 : vector<3x256xf32>, i32 -> vector<3x256xf32>
    %c0_2 = arith.constant 0 : index
    %c0_3 = arith.constant 0 : index
    %c0_4 = arith.constant 0 : index
    %3 = vector.load %arg2[%c0_2, %c0_3, %c0_4] : memref<9x1x256xf32, #tpu.memory_space<vmem>>, vector<1x1x256xf32>
    %4 = vector.shape_cast %3 : vector<1x1x256xf32> to vector<1x256xf32>
    %5 = vector.broadcast %4 : vector<1x256xf32> to vector<3x256xf32>
    %6 = arith.mulf %2, %5 : vector<3x256xf32>
    %c16_i32 = arith.constant 16 : i32
    %7 = tpu.dynamic_rotate %1 by %c16_i32 dim 1 : vector<3x256xf32>, i32 -> vector<3x256xf32>
    %c1 = arith.constant 1 : index
    %c0_5 = arith.constant 0 : index
    %c0_6 = arith.constant 0 : index
    %8 = vector.load %arg2[%c1, %c0_5, %c0_6] : memref<9x1x256xf32, #tpu.memory_space<vmem>>, vector<1x1x256xf32>
    %9 = vector.shape_cast %8 : vector<1x1x256xf32> to vector<1x256xf32>
    %10 = vector.broadcast %9 : vector<1x256xf32> to vector<3x256xf32>
    %11 = arith.mulf %7, %10 : vector<3x256xf32>
    %c15_i32 = arith.constant 15 : i32
    %12 = tpu.dynamic_rotate %1 by %c15_i32 dim 1 : vector<3x256xf32>, i32 -> vector<3x256xf32>
    %c2 = arith.constant 2 : index
    %c0_7 = arith.constant 0 : index
    %c0_8 = arith.constant 0 : index
    %13 = vector.load %arg2[%c2, %c0_7, %c0_8] : memref<9x1x256xf32, #tpu.memory_space<vmem>>, vector<1x1x256xf32>
    %14 = vector.shape_cast %13 : vector<1x1x256xf32> to vector<1x256xf32>
    %15 = vector.broadcast %14 : vector<1x256xf32> to vector<3x256xf32>
    %16 = arith.mulf %12, %15 : vector<3x256xf32>
    %c1_i32 = arith.constant 1 : i32
    %17 = tpu.dynamic_rotate %1 by %c1_i32 dim 1 : vector<3x256xf32>, i32 -> vector<3x256xf32>
    %c3 = arith.constant 3 : index
    %c0_9 = arith.constant 0 : index
    %c0_10 = arith.constant 0 : index
    %18 = vector.load %arg2[%c3, %c0_9, %c0_10] : memref<9x1x256xf32, #tpu.memory_space<vmem>>, vector<1x1x256xf32>
    %19 = vector.shape_cast %18 : vector<1x1x256xf32> to vector<1x256xf32>
    %20 = vector.broadcast %19 : vector<1x256xf32> to vector<3x256xf32>
    %21 = arith.mulf %17, %20 : vector<3x256xf32>
    %c255_i32 = arith.constant 255 : i32
    %22 = tpu.dynamic_rotate %1 by %c255_i32 dim 1 : vector<3x256xf32>, i32 -> vector<3x256xf32>
    %c5 = arith.constant 5 : index
    %c0_11 = arith.constant 0 : index
    %c0_12 = arith.constant 0 : index
    %23 = vector.load %arg2[%c5, %c0_11, %c0_12] : memref<9x1x256xf32, #tpu.memory_space<vmem>>, vector<1x1x256xf32>
    %24 = vector.shape_cast %23 : vector<1x1x256xf32> to vector<1x256xf32>
    %25 = vector.broadcast %24 : vector<1x256xf32> to vector<3x256xf32>
    %26 = arith.mulf %22, %25 : vector<3x256xf32>
    %c241_i32 = arith.constant 241 : i32
    %27 = tpu.dynamic_rotate %1 by %c241_i32 dim 1 : vector<3x256xf32>, i32 -> vector<3x256xf32>
    %c6 = arith.constant 6 : index
    %c0_13 = arith.constant 0 : index
    %c0_14 = arith.constant 0 : index
    %28 = vector.load %arg2[%c6, %c0_13, %c0_14] : memref<9x1x256xf32, #tpu.memory_space<vmem>>, vector<1x1x256xf32>
    %29 = vector.shape_cast %28 : vector<1x1x256xf32> to vector<1x256xf32>
    %30 = vector.broadcast %29 : vector<1x256xf32> to vector<3x256xf32>
    %31 = arith.mulf %27, %30 : vector<3x256xf32>
    %c240_i32 = arith.constant 240 : i32
    %32 = tpu.dynamic_rotate %1 by %c240_i32 dim 1 : vector<3x256xf32>, i32 -> vector<3x256xf32>
    %c7 = arith.constant 7 : index
    %c0_15 = arith.constant 0 : index
    %c0_16 = arith.constant 0 : index
    %33 = vector.load %arg2[%c7, %c0_15, %c0_16] : memref<9x1x256xf32, #tpu.memory_space<vmem>>, vector<1x1x256xf32>
    %34 = vector.shape_cast %33 : vector<1x1x256xf32> to vector<1x256xf32>
    %35 = vector.broadcast %34 : vector<1x256xf32> to vector<3x256xf32>
    %36 = arith.mulf %32, %35 : vector<3x256xf32>
    %c239_i32 = arith.constant 239 : i32
    %37 = tpu.dynamic_rotate %1 by %c239_i32 dim 1 : vector<3x256xf32>, i32 -> vector<3x256xf32>
    %c8 = arith.constant 8 : index
    %c0_17 = arith.constant 0 : index
    %c0_18 = arith.constant 0 : index
    %38 = vector.load %arg2[%c8, %c0_17, %c0_18] : memref<9x1x256xf32, #tpu.memory_space<vmem>>, vector<1x1x256xf32>
    %39 = vector.shape_cast %38 : vector<1x1x256xf32> to vector<1x256xf32>
    %40 = vector.broadcast %39 : vector<1x256xf32> to vector<3x256xf32>
    %41 = arith.mulf %37, %40 : vector<3x256xf32>
    %42 = tpu.concatenate %6, %11, %16, %21, %1, %26, %31, %36, %41 in 0 : vector<3x256xf32>, vector<3x256xf32>, vector<3x256xf32>, vector<3x256xf32>, vector<3x256xf32>, vector<3x256xf32>, vector<3x256xf32>, vector<3x256xf32>, vector<3x256xf32> -> vector<27x256xf32>
    %c0_19 = arith.constant 0 : index
    %c0_20 = arith.constant 0 : index
    %43 = vector.load %arg3[%c0_19, %c0_20] : memref<8x27xf32, #tpu.memory_space<vmem>>, vector<8x27xf32>
    %cst = arith.constant dense<0.000000e+00> : vector<8x256xf32>
    %44 = tpu.matmul %43, %42, %cst {dimension_numbers = #tpu.dot_dimension_numbers<[1], [0], [0], [1], [0, 0, 1, 1], [], []>} : vector<8x27xf32>, vector<27x256xf32>, vector<8x256xf32> -> vector<8x256xf32>
    %c0_21 = arith.constant 0 : index
    %c0_22 = arith.constant 0 : index
    %45 = vector.load %arg4[%c0_21, %c0_22] : memref<8x1xf32, #tpu.memory_space<vmem>>, vector<8x1xf32>
    %46 = vector.broadcast %45 : vector<8x1xf32> to vector<8x256xf32>
    %47 = arith.addf %44, %46 : vector<8x256xf32>
    %cst_23 = arith.constant 0.000000e+00 : f32
    %48 = vector.broadcast %cst_23 : f32 to vector<8x256xf32>
    %49 = arith.maximumf %47, %48 : vector<8x256xf32>
    %c17_i32_24 = arith.constant 17 : i32
    %50 = tpu.dynamic_rotate %49 by %c17_i32_24 dim 1 : vector<8x256xf32>, i32 -> vector<8x256xf32>
    %c0_25 = arith.constant 0 : index
    %c0_26 = arith.constant 0 : index
    %c0_27 = arith.constant 0 : index
    %51 = vector.load %arg2[%c0_25, %c0_26, %c0_27] : memref<9x1x256xf32, #tpu.memory_space<vmem>>, vector<1x1x256xf32>
    %52 = vector.shape_cast %51 : vector<1x1x256xf32> to vector<1x256xf32>
    %53 = vector.broadcast %52 : vector<1x256xf32> to vector<8x256xf32>
    %54 = arith.mulf %50, %53 : vector<8x256xf32>
    %c16_i32_28 = arith.constant 16 : i32
    %55 = tpu.dynamic_rotate %49 by %c16_i32_28 dim 1 : vector<8x256xf32>, i32 -> vector<8x256xf32>
    %c1_29 = arith.constant 1 : index
    %c0_30 = arith.constant 0 : index
    %c0_31 = arith.constant 0 : index
    %56 = vector.load %arg2[%c1_29, %c0_30, %c0_31] : memref<9x1x256xf32, #tpu.memory_space<vmem>>, vector<1x1x256xf32>
    %57 = vector.shape_cast %56 : vector<1x1x256xf32> to vector<1x256xf32>
    %58 = vector.broadcast %57 : vector<1x256xf32> to vector<8x256xf32>
    %59 = arith.mulf %55, %58 : vector<8x256xf32>
    %c15_i32_32 = arith.constant 15 : i32
    %60 = tpu.dynamic_rotate %49 by %c15_i32_32 dim 1 : vector<8x256xf32>, i32 -> vector<8x256xf32>
    %c2_33 = arith.constant 2 : index
    %c0_34 = arith.constant 0 : index
    %c0_35 = arith.constant 0 : index
    %61 = vector.load %arg2[%c2_33, %c0_34, %c0_35] : memref<9x1x256xf32, #tpu.memory_space<vmem>>, vector<1x1x256xf32>
    %62 = vector.shape_cast %61 : vector<1x1x256xf32> to vector<1x256xf32>
    %63 = vector.broadcast %62 : vector<1x256xf32> to vector<8x256xf32>
    %64 = arith.mulf %60, %63 : vector<8x256xf32>
    %c1_i32_36 = arith.constant 1 : i32
    %65 = tpu.dynamic_rotate %49 by %c1_i32_36 dim 1 : vector<8x256xf32>, i32 -> vector<8x256xf32>
    %c3_37 = arith.constant 3 : index
    %c0_38 = arith.constant 0 : index
    %c0_39 = arith.constant 0 : index
    %66 = vector.load %arg2[%c3_37, %c0_38, %c0_39] : memref<9x1x256xf32, #tpu.memory_space<vmem>>, vector<1x1x256xf32>
    %67 = vector.shape_cast %66 : vector<1x1x256xf32> to vector<1x256xf32>
    %68 = vector.broadcast %67 : vector<1x256xf32> to vector<8x256xf32>
    %69 = arith.mulf %65, %68 : vector<8x256xf32>
    %c255_i32_40 = arith.constant 255 : i32
    %70 = tpu.dynamic_rotate %49 by %c255_i32_40 dim 1 : vector<8x256xf32>, i32 -> vector<8x256xf32>
    %c5_41 = arith.constant 5 : index
    %c0_42 = arith.constant 0 : index
    %c0_43 = arith.constant 0 : index
    %71 = vector.load %arg2[%c5_41, %c0_42, %c0_43] : memref<9x1x256xf32, #tpu.memory_space<vmem>>, vector<1x1x256xf32>
    %72 = vector.shape_cast %71 : vector<1x1x256xf32> to vector<1x256xf32>
    %73 = vector.broadcast %72 : vector<1x256xf32> to vector<8x256xf32>
    %74 = arith.mulf %70, %73 : vector<8x256xf32>
    %c241_i32_44 = arith.constant 241 : i32
    %75 = tpu.dynamic_rotate %49 by %c241_i32_44 dim 1 : vector<8x256xf32>, i32 -> vector<8x256xf32>
    %c6_45 = arith.constant 6 : index
    %c0_46 = arith.constant 0 : index
    %c0_47 = arith.constant 0 : index
    %76 = vector.load %arg2[%c6_45, %c0_46, %c0_47] : memref<9x1x256xf32, #tpu.memory_space<vmem>>, vector<1x1x256xf32>
    %77 = vector.shape_cast %76 : vector<1x1x256xf32> to vector<1x256xf32>
    %78 = vector.broadcast %77 : vector<1x256xf32> to vector<8x256xf32>
    %79 = arith.mulf %75, %78 : vector<8x256xf32>
    %c240_i32_48 = arith.constant 240 : i32
    %80 = tpu.dynamic_rotate %49 by %c240_i32_48 dim 1 : vector<8x256xf32>, i32 -> vector<8x256xf32>
    %c7_49 = arith.constant 7 : index
    %c0_50 = arith.constant 0 : index
    %c0_51 = arith.constant 0 : index
    %81 = vector.load %arg2[%c7_49, %c0_50, %c0_51] : memref<9x1x256xf32, #tpu.memory_space<vmem>>, vector<1x1x256xf32>
    %82 = vector.shape_cast %81 : vector<1x1x256xf32> to vector<1x256xf32>
    %83 = vector.broadcast %82 : vector<1x256xf32> to vector<8x256xf32>
    %84 = arith.mulf %80, %83 : vector<8x256xf32>
    %c239_i32_52 = arith.constant 239 : i32
    %85 = tpu.dynamic_rotate %49 by %c239_i32_52 dim 1 : vector<8x256xf32>, i32 -> vector<8x256xf32>
    %c8_53 = arith.constant 8 : index
    %c0_54 = arith.constant 0 : index
    %c0_55 = arith.constant 0 : index
    %86 = vector.load %arg2[%c8_53, %c0_54, %c0_55] : memref<9x1x256xf32, #tpu.memory_space<vmem>>, vector<1x1x256xf32>
    %87 = vector.shape_cast %86 : vector<1x1x256xf32> to vector<1x256xf32>
    %88 = vector.broadcast %87 : vector<1x256xf32> to vector<8x256xf32>
    %89 = arith.mulf %85, %88 : vector<8x256xf32>
    %90 = tpu.concatenate %54, %59, %64, %69, %49, %74, %79, %84, %89 in 0 : vector<8x256xf32>, vector<8x256xf32>, vector<8x256xf32>, vector<8x256xf32>, vector<8x256xf32>, vector<8x256xf32>, vector<8x256xf32>, vector<8x256xf32>, vector<8x256xf32> -> vector<72x256xf32>
    %c0_56 = arith.constant 0 : index
    %c0_57 = arith.constant 0 : index
    %91 = vector.load %arg5[%c0_56, %c0_57] : memref<8x72xf32, #tpu.memory_space<vmem>>, vector<8x72xf32>
    %cst_58 = arith.constant dense<0.000000e+00> : vector<8x256xf32>
    %92 = tpu.matmul %91, %90, %cst_58 {dimension_numbers = #tpu.dot_dimension_numbers<[1], [0], [0], [1], [0, 0, 1, 1], [], []>} : vector<8x72xf32>, vector<72x256xf32>, vector<8x256xf32> -> vector<8x256xf32>
    %c0_59 = arith.constant 0 : index
    %c0_60 = arith.constant 0 : index
    %93 = vector.load %arg6[%c0_59, %c0_60] : memref<8x1xf32, #tpu.memory_space<vmem>>, vector<8x1xf32>
    %94 = vector.broadcast %93 : vector<8x1xf32> to vector<8x256xf32>
    %95 = arith.addf %92, %94 : vector<8x256xf32>
    %cst_61 = arith.constant 0.000000e+00 : f32
    %96 = vector.broadcast %cst_61 : f32 to vector<8x256xf32>
    %97 = arith.maximumf %95, %96 : vector<8x256xf32>
    %c0_62 = arith.constant 0 : index
    %c0_63 = arith.constant 0 : index
    %c0_64 = arith.constant 0 : index
    %98 = vector.load %arg7[%c0_62, %c0_63, %c0_64] : memref<1x8x256xf32, #tpu.memory_space<vmem>>, vector<1x8x256xf32>
    %99 = vector.shape_cast %98 : vector<1x8x256xf32> to vector<8x256xf32>
    %100 = vector.shape_cast %97 : vector<8x256xf32> to vector<1x8x256xf32>
    tpu.vector_store %arg7[%c0_62, %c0_63, %c0_64], %100 {strides = array<i32>} : memref<1x8x256xf32, #tpu.memory_space<vmem>>, vector<1x8x256xf32>,
    return
  }
  func.func @transform_0(%arg0: i32) -> (i32, i32, i32) {
    %c0_i32 = arith.constant 0 : i32
    %c0_i32_0 = arith.constant 0 : i32
    %c0_i32_1 = arith.constant 0 : i32
    return %arg0, %c0_i32, %c0_i32_0 : i32, i32, i32
  }
  func.func @transform_1(%arg0: i32) -> (i32, i32, i32) {
    %c0_i32 = arith.constant 0 : i32
    %c0_i32_0 = arith.constant 0 : i32
    %c0_i32_1 = arith.constant 0 : i32
    %c0_i32_2 = arith.constant 0 : i32
    return %c0_i32, %c0_i32_0, %c0_i32_1 : i32, i32, i32
  }
  func.func @transform_2(%arg0: i32) -> (i32, i32) {
    %c0_i32 = arith.constant 0 : i32
    %c0_i32_0 = arith.constant 0 : i32
    %c0_i32_1 = arith.constant 0 : i32
    return %c0_i32, %c0_i32_0 : i32, i32
  }
  func.func @transform_3(%arg0: i32) -> (i32, i32) {
    %c0_i32 = arith.constant 0 : i32
    %c0_i32_0 = arith.constant 0 : i32
    %c0_i32_1 = arith.constant 0 : i32
    return %c0_i32, %c0_i32_0 : i32, i32
  }
  func.func @transform_4(%arg0: i32) -> (i32, i32) {
    %c0_i32 = arith.constant 0 : i32
    %c0_i32_0 = arith.constant 0 : i32
    %c0_i32_1 = arith.constant 0 : i32
    return %c0_i32, %c0_i32_0 : i32, i32
  }
  func.func @transform_5(%arg0: i32) -> (i32, i32) {
    %c0_i32 = arith.constant 0 : i32
    %c0_i32_0 = arith.constant 0 : i32
    %c0_i32_1 = arith.constant 0 : i32
    return %c0_i32, %c0_i32_0 : i32, i32
  }
  func.func @transform_6(%arg0: i32) -> (i32, i32, i32) {
    %c0_i32 = arith.constant 0 : i32
    %c0_i32_0 = arith.constant 0 : i32
    %c0_i32_1 = arith.constant 0 : i32
    return %arg0, %c0_i32, %c0_i32_0 : i32, i32, i32
  }
}

</mosaic_0001>

<bundles_post_ra>
// kernel: tpu_custom_call.1
= control target key start
LH: loop header
LB: loop body
LE: loop exit
PB: predicated region body
PF: predicated region fallthrough
CT: control target
= control target key end

     0   :  { %11 = vsyncpa [#allocation3], 0  ;;  %s1340_s0 = inlined_call_operand.vmem [shape: f32[2,3,256], index: 0, kind: input, shape index: {}]   ;;  %s1341_s1 = inlined_call_operand.vmem [shape: f32[9,1,256], index: 1, kind: input, shape index: {}]   ;;  %s1342_s2 = inlined_call_operand.vmem [shape: f32[8,27], index: 2, kind: input, shape index: {}]   ;;  %s1343_s3 = inlined_call_operand.vmem [shape: f32[8,1], index: 3, kind: input, shape index: {}]   ;;  %s1344_s4 = inlined_call_operand.vmem [shape: f32[8,72], index: 4, kind: input, shape index: {}]   ;;  %s1345_s5 = inlined_call_operand.vmem [shape: f32[8,1], index: 5, kind: input, shape index: {}]   ;;  %s1346_s6 = inlined_call_operand.hbm [shape: f32[2,8,256], index: 6, kind: output, shape index: {}]  }
   0x1   :  { %13 = vsyncpa [#allocation3 + $0x1], 0  ;;  %s989_s21 = smov 0   ;;  %s991_s22 = smov 0  }
   0x2   :  { %s993_s23 = smov 0   ;;  %s995_s24 = smov 0  }
   0x3 LB: > { %s1010_s25 = sadd.s32 4294967295, %s941_s24   ;;  %s804_s26 = sadd.s32 4294967294, %s941_s24   ;;  %s941_s24 = sphi %s995_s24, %s1355_s24   ;;  %s937_s23 = sphi %s993_s23, %s1354_s23   ;;  %s933_s22 = sphi %s991_s22, %s1353_s22   ;;  %s929_s21 = sphi %s989_s21, %s1352_s21  }
   0x4   : > { %s1014_s27 = sadd.s32 1, %s941_s24   ;;  %s157_s28 = sadd.s32 1, %s937_s23 }
   0x5   : > { %s154_s29 = ssub.s32 %s941_s24, %s1014_s27  ;;  %p167_p0 = scmp.ne.s32.totalorder %s937_s23, %s933_s22 }
   0x6   : > { %p155_p1 = scmp.eq.s32.totalorder %s154_s29, 0  ;;  %p168_p2 = scmp.eq.s32.totalorder %s1010_s25, 1 }
   0x7   : > { %p173_p3 = scmp.ne.s32.totalorder %s933_s22, %s929_s21  ;;  %p174_p4 = scmp.eq.s32.totalorder %s804_s26, 1 }
   0x8   : > { %s1025_s30 = scalar_select %p155_p1, %s937_s23, %s157_s28  }
   0x9   : > { %p1027_p5 = por %p168_p2, %p167_p0  ;;  %p1031_p6 = por %p174_p4, %p173_p3 }
   0xa   : > { %p807_p7 = scmp.ge.s32.totalorder %s941_s24, 1  ;;  %p215_p8 = scmp.lt.s32.totalorder %s941_s24, 3 }
   0xc   : > { %p216_p9 = pnand %p807_p7, %p215_p8 }
   0xd   : > { %p245_p10 = scmp.lt.s32.totalorder (!%p216_p9), %s1010_s25, 1  ;;  %s943_s14 = smov (!%p216_p9), 113  }
   0xe   : > { %219 = sbr.rel (%p216_p9) target bundleno = 735 (0x2df), region = 44  ;;  %s944_s15 = smov (!%p216_p9), 127  }
   0xf   : > { %s945_s16 = smov (!%p216_p9), 15   ;;  %s946_s17 = smov (!%p216_p9), 1  }
  0x10   : > { %s947_s18 = smov (!%p216_p9), 112   ;;  %s948_s19 = smov (!%p216_p9), 111  }
  0x11   : > { %s951_s20 = smov (!%p216_p9), 16   ;;  %s1347_s26 = smov (!%p216_p9), 17  }
  0x13   : > { %s246_s9 = scalar_select %p245_p10, %s1010_s25, 1  ;;  %v949_v2 = vmov 0.0   ;;  %v950_v3 = vmov 0   ;;  %v491_v4 = vld [vmem:[%s1343_s3] sm:$0xff]  ;;  %v258_v5 = vlaneseq  ;;  %v815_v14 = vld [vmem:[%s1341_s1 + $0xc] sm:$0x3] }
  0x14   : > { %571 = vmatprep.mubr.f32.mxu0 %v949_v2  ;;  %719 = vmatprep.mubr.f32.mxu1 %v949_v2  ;;  %v812_v15 = vld [vmem:[%s1341_s1 + $0x4] sm:$0x3]  ;;  %v814_v16 = vld [vmem:[%s1341_s1 + $0xa] sm:$0x3]  ;;  %v813_v17 = vld [vmem:[%s1341_s1 + $0x6] sm:$0x3] }
  0x15   : > { %s827_s10 = sshll.u32 %s246_s9, 3  ;;  %878 = vset.pattern.permute.xlu0 %v950_v3  ;;  %v266_v8 = vshrl.u32 %v258_v5, 7  ;;  %v1073_v9 = vand.u32 127, %v258_v5  ;;  %v816_v21 = vld [vmem:[%s1341_s1 + $0xe] sm:$0x3]  ;;  %vm475_vm5 = vcmask 1040384  }
  0x16   : > { %s249_s13 = scalar_lea.vmem %s1340_s0, %s827_s10  ;;  %v817_v31 = vld [vmem:[%s1341_s1 + $0x10] sm:$0x3]  ;;  %vm484_vm6 = vcmask 1041408   ;;  %vm478_vm7 = vcmask 1043456   ;;  %vm487_vm9 = vcmask 1044480   ;;  %vm469_vm10 = vcmask 1042432  }
  0x17   : > { %v1042_v0 = vld [vmem:[%s249_s13] sm:$0x77]  ;;  %v1075_v11 = vsub.s32 0, %v266_v8  ;;  %v1077_v13 = vsub.s32 1, %v266_v8  ;;  %vm369_vm0 = vcmp.lt.s32.totalorder %v1073_v9, 113  ;;  %vm303_vm1 = vcmp.lt.s32.totalorder %v1073_v9, 15 }
  0x18   : > { %365 = vrot.lane.b32.xlu1 %v1042_v0, %s943_s14  ;;  %343 = vrot.lane.b32.xlu0 %v1042_v0, %s944_s15  ;;  %v252_v1 = vcombine.high %v1042_v0, %v1042_v0  ;;  %vm347_vm2 = vcmp.lt.s32.totalorder %v1073_v9, 127  ;;  %vm325_vm3 = vcmp.lt.s32.totalorder %v1073_v9, 1  ;;  %vm391_vm4 = vcmp.lt.s32.totalorder %v1073_v9, 112  ;;  %v811_v55 = vld [vmem:[%s1341_s1 + $0x2] sm:$0x3] }
  0x19   : > { %v1093_v18 = vrot.slane %v815_v14, %v1075_v11  ;;  %v1102_v22 = vrot.slane %v815_v14, %v1077_v13  ;;  %v1105_v23 = vrot.slane %v812_v15, %v1075_v11  ;;  %v1108_v24 = vrot.slane %v812_v15, %v1077_v13 }
  0x1a   : > { %v1111_v25 = vrot.slane %v814_v16, %v1075_v11  ;;  %v1114_v26 = vrot.slane %v814_v16, %v1077_v13  ;;  %v1117_v27 = vrot.slane %v813_v17, %v1075_v11  ;;  %v1120_v28 = vrot.slane %v813_v17, %v1077_v13  ;;  %v263_v16 = vld [vmem:[%s1341_s1] sm:$0x3] }
  0x1b   : > { %v1124_v29 = vrot.slane %v816_v21, %v1075_v11  ;;  %v1127_v30 = vrot.slane %v816_v21, %v1077_v13  ;;  %v449_v32 = vcombine.low %v1042_v0, %v1042_v0  ;;  %vm413_vm8 = vcmp.lt.s32.totalorder %v1073_v9, 111 }
  0x1c   : > { %299 = vrot.lane.b32.xlu0 %v1042_v0, %s945_s16  ;;  %367 = vrot.lane.b32.xlu1 %v252_v1, %s943_s14  ;;  %v1154_v45 = vrot.slane %v817_v31, %v1075_v11  ;;  %v1161_v48 = vrot.slane %v817_v31, %v1077_v13  ;;  %vm281_vm11 = vcmp.lt.s32.totalorder %v1073_v9, 16  ;;  %v1184_v2 = vrot.slane %v811_v55, %v1077_v13 }
  0x1d   : > { %vm481_vm12 = vcmask 1046528   ;;  %vm260_vm13 = vcmp.lt.s32.totalorder %v1073_v9, 17  ;;  %vm472_vm14 = vcmask 1045504   ;;  %vm497_vm15 = vcmask 220160  }
  0x20   : > { %301 = vrot.lane.b32.xlu1 %v252_v1, %s945_s16  ;;  %345 = vrot.lane.b32.xlu0 %v252_v1, %s944_s15 }
  0x24   : > { %323 = vrot.lane.b32.xlu1 %v252_v1, %s946_s17  ;;  %321 = vrot.lane.b32.xlu0 %v1042_v0, %s946_s17 }
  0x28   : > { %389 = vrot.lane.b32.xlu1 %v252_v1, %s947_s18  ;;  %387 = vrot.lane.b32.xlu0 %v1042_v0, %s947_s18 }
  0x2c   : > { %411 = vrot.lane.b32.xlu1 %v252_v1, %s948_s19  ;;  %409 = vrot.lane.b32.xlu0 %v1042_v0, %s948_s19 }
  0x30   : > { %279 = vrot.lane.b32.xlu1 %v252_v1, %s951_s20  ;;  %277 = vrot.lane.b32.xlu0 %v1042_v0, %s951_s20 }
  0x34   : > { %256 = vrot.lane.b32.xlu1 %v252_v1, %s1347_s26  ;;  %254 = vrot.lane.b32.xlu0 %v1042_v0, %s1347_s26  ;;  %v1181_v1 = vrot.slane %v811_v55, %v1075_v11  ;;  %s1351_s26 = smov 17  }
  0x38   : > { %494 = vperm.xlu0 %878, %v491_v4  }
  0x8a   : > { %v366_v6 = vpop.permute.xlu1 %365  ;;  %v344_v7 = vpop.permute.xlu0 %343 }
  0x8e   : > { %v300_v10 = vpop.permute.xlu0 %299  ;;  %v368_v12 = vpop.permute.xlu1 %367 }
  0x8f   : > { %v370_v33 = vsel %vm369_vm0, %v366_v6, %v368_v12  ;;  %v371_v34 = vsel %vm369_vm0, %v368_v12, %v366_v6 }
  0x90   : > { %v385_v46 = vmul.f32 %v1093_v18, %v370_v33  ;;  %v386_v49 = vmul.f32 %v1102_v22, %v371_v34 }
  0x92   : > { %v302_v19 = vpop.permute.xlu1 %301  ;;  %v346_v20 = vpop.permute.xlu0 %345  ;;  %v459_v62 = vrot.slane %v385_v46, 6  ;;  %v460_v3 = vrot.slane %v386_v49, 6 }
  0x93   : > { %v304_v35 = vsel %vm303_vm1, %v300_v10, %v302_v19  ;;  %v305_v36 = vsel %vm303_vm1, %v302_v19, %v300_v10  ;;  %v348_v39 = vsel %vm347_vm2, %v344_v7, %v346_v20  ;;  %v349_v40 = vsel %vm347_vm2, %v346_v20, %v344_v7 }
  0x94   : > { %v1158_v47 = vmul.f32 %v1108_v24, %v304_v35  ;;  %v1165_v50 = vmul.f32 %v1105_v23, %v305_v36  ;;  %v363_v51 = vmul.f32 %v1111_v25, %v348_v39  ;;  %v364_v52 = vmul.f32 %v1114_v26, %v349_v40 }
  0x96   : > { %v324_v37 = vpop.permute.xlu1 %323  ;;  %v322_v38 = vpop.permute.xlu0 %321  ;;  %v440_v63 = vrot.slane %v1158_v47, 2  ;;  %v439_v4 = vrot.slane %v1165_v50, 2  ;;  %v453_v5 = vrot.slane %v363_v51, 1  ;;  %v454_v6 = vrot.slane %v364_v52, 1 }
  0x97   : > { %v326_v41 = vsel %vm325_vm3, %v322_v38, %v324_v37  ;;  %v327_v42 = vsel %vm325_vm3, %v324_v37, %v322_v38  ;;  %v1205_v37 = vrot.slane %v263_v16, %v1075_v11 }
  0x98   : > { %v341_v43 = vmul.f32 %v1117_v27, %v327_v42  ;;  %v342_v44 = vmul.f32 %v1120_v28, %v326_v41  ;;  %v486_v34 = vsel %vm484_vm6, %v454_v6, %v460_v3  ;;  %v485_v35 = vsel %vm484_vm6, %v453_v5, %v459_v62 }
  0x9a   : > { %v390_v53 = vpop.permute.xlu1 %389  ;;  %v388_v54 = vpop.permute.xlu0 %387  ;;  %v446_v56 = vrot.slane %v342_v44, 7  ;;  %v445_v59 = vrot.slane %v341_v43, 7  ;;  %v1221_v44 = vrot.slane %v263_v16, %v1077_v13 }
  0x9b   : > { %v392_v57 = vsel %vm391_vm4, %v388_v54, %v390_v53  ;;  %v393_v58 = vsel %vm391_vm4, %v390_v53, %v388_v54 }
  0x9c   : > { %v407_v60 = vmul.f32 %v1124_v29, %v392_v57  ;;  %v408_v61 = vmul.f32 %v1127_v30, %v393_v58  ;;  %v477_v15 = vsel %vm475_vm5, %v440_v63, %v446_v56  ;;  %v476_v21 = vsel %vm475_vm5, %v439_v4, %v445_v59  ;;  %v490_v58 = vld [vmem:[%s1342_s2] sm:$0xff] }
  0x9d   : > { %v480_v36 = vsel %vm478_vm7, %v477_v15, %v1042_v0  ;;  %v479_v41 = vsel %vm478_vm7, %v476_v21, %v449_v32 }
  0x9e   : > { %v412_v7 = vpop.permute.xlu1 %411  ;;  %v410_v8 = vpop.permute.xlu0 %409  ;;  %v466_v10 = vrot.slane %v408_v61, 3  ;;  %v465_v17 = vrot.slane %v407_v60, 3  ;;  %v483_v46 = vsel %vm481_vm12, %v480_v36, %v454_v6  ;;  %v482_v0 = vsel %vm481_vm12, %v479_v41, %v453_v5 }
  0x9f   : > { %v414_v12 = vsel %vm413_vm8, %v410_v8, %v412_v7  ;;  %v415_v14 = vsel %vm413_vm8, %v412_v7, %v410_v8 }
  0xa0   : > { %v429_v19 = vmul.f32 %v1154_v45, %v414_v12  ;;  %v430_v20 = vmul.f32 %v1161_v48, %v415_v14  ;;  %v489_v40 = vsel %vm487_vm9, %v486_v34, %v466_v10  ;;  %v488_v43 = vsel %vm487_vm9, %v485_v35, %v465_v17 }
  0xa2   : > { %v280_v31 = vpop.permute.xlu1 %279  ;;  %818 = vmatprep.subr.msk.mxu0 %vm469_vm10, %v430_v20  ;;  %v278_v33 = vpop.permute.xlu0 %277 }
  0xa3   : > { %v282_v38 = vsel %vm281_vm11, %v278_v33, %v280_v31  ;;  %v283_v39 = vsel %vm281_vm11, %v280_v31, %v278_v33  ;;  %819 = vmatpush1.msk.msra.mxu0 %vm469_vm10, %v429_v19 }
  0xa4   : > { %v297_v42 = vmul.f32 %v1181_v1, %v283_v39  ;;  %v298_v11 = vmul.f32 %v1184_v2, %v282_v38  ;;  %533 = vmatprep.subr.mxu0 %v489_v40 }
  0xa5   : > { %534 = vmatpush1.msra.mxu0 %v488_v43 }
  0xa6   : > { %v257_v47 = vpop.permute.xlu1 %256  ;;  %535 = vmatprep.subr.mxu0 %v483_v46  ;;  %v255_v49 = vpop.permute.xlu0 %254  ;;  %v433_v51 = vrot.slane %v297_v42, 5  ;;  %v434_v52 = vrot.slane %v298_v11, 5 }
  0xa7   : > { %v261_v32 = vsel %vm260_vm13, %v255_v49, %v257_v47  ;;  %v262_v50 = vsel %vm260_vm13, %v257_v47, %v255_v49  ;;  %536 = vmatpush1.msra.mxu0 %v482_v0 }
  0xa8   : > { %v275_v13 = vmul.f32 %v1205_v37, %v262_v50  ;;  %v276_v53 = vmul.f32 %v1221_v44, %v261_v32 }
  0xaa   : > { %v471_v54 = vsel %vm469_vm10, %v276_v53, %v434_v52  ;;  %v470_v55 = vsel %vm469_vm10, %v275_v13, %v433_v51 }
  0xab   : > { %v474_v56 = vsel %vm472_vm14, %v471_v54, %v440_v63  ;;  %v473_v57 = vsel %vm472_vm14, %v470_v55, %v439_v4  ;;  %v645_v4 = vld [vmem:[%s1345_s5] sm:$0xff] }
  0xac   : > { %537 = vmatprep.subr.mxu0 %v474_v56 }
  0xad   : > { %538 = vmatpush1.msra.mxu0 %v473_v57 }
  0xae   : > { %820 = vmatmul.mubr.msk.f32.vlgmr.msra.gmra.mxu0 %vm497_vm15, %v490_v58 }
  0xb3   : > { %v495_v59 = vpop.permute.xlu0 %494 }
 0x16e   : > { %v573_v60 = vpop.f32.mrf.mxu0 }
 0x16f   : > { %v574_v61 = vadd.f32 %v573_v60, %v495_v59 }
 0x170   : > { %v575_v62 = vpop.f32.mrf.mxu0 }
 0x171   : > { %v578_v3 = vmax.f32 %v574_v61, 0.0  ;;  %v576_v5 = vadd.f32 %v575_v62, %v495_v59 }
 0x173   : > { %628 = vrot.lane.b32.xlu0 %v578_v3, %s947_s18  ;;  %636 = vrot.lane.b32.xlu1 %v578_v3, %s948_s19  ;;  %v579_v63 = vmax.f32 %v576_v5, 0.0 }
 0x177   : > { %620 = vrot.lane.b32.xlu0 %v578_v3, %s943_s14  ;;  %638 = vrot.lane.b32.xlu1 %v579_v63, %s948_s19 }
 0x17b   : > { %612 = vrot.lane.b32.xlu0 %v578_v3, %s944_s15  ;;  %630 = vrot.lane.b32.xlu1 %v579_v63, %s947_s18  ;;  %s828_s18 = sshll.u32 %s1010_s25, 8 }
 0x17c   : > { %s743_s29 = scalar_lea.hbm %s1346_s6, %s828_s18 }
 0x17f   : > { %604 = vrot.lane.b32.xlu0 %v578_v3, %s946_s17  ;;  %622 = vrot.lane.b32.xlu1 %v579_v63, %s943_s14 }
 0x183   : > { %596 = vrot.lane.b32.xlu0 %v578_v3, %s945_s16  ;;  %614 = vrot.lane.b32.xlu1 %v579_v63, %s944_s15 }
 0x187   : > { %588 = vrot.lane.b32.xlu0 %v578_v3, %s951_s20  ;;  %606 = vrot.lane.b32.xlu1 %v579_v63, %s946_s17 }
 0x18b   : > { %580 = vrot.lane.b32.xlu0 %v578_v3, %s1351_s26  ;;  %598 = vrot.lane.b32.xlu1 %v579_v63, %s945_s16  ;;  %s242_s16 = sand.u32 1, %s933_s22  }
 0x18c   : > { %s808_s17 = sshll.u32 %s242_s16, 4  ;;  %s731_s9 = scalar_lea.sflag [#allocation3], %s242_s16 }
 0x18f   : > { %648 = vperm.xlu0 %878, %v645_v4   ;;  %590 = vrot.lane.b32.xlu1 %v579_v63, %s951_s20  ;;  %s244_s20 = scalar_lea.vmem [#allocation2], %s808_s17 }
 0x190   : > { %s745_s12 = sshll.u32 %s244_s20, 4  ;;  %s746_s12 = int_to_ptr.vmem [resolvable:$true] %s745_s12 }
 0x191   : > { %s881_s10 = scalar_lea.vmem %s746_s12, 256 }
 0x192   : > { %p882_p11 = scmp.ne.s32.totalorder %s746_s12, %s881_s10 }
 0x193   : > { %582 = vrot.lane.b32.xlu1 %v579_v63, %s1351_s26  ;;  %s953_s26 = smov [#allocation2]  }
 0x194   : > { %p883_p12 = pnand %p882_p11, %p1027_p5  ;;  %s885_s25 = sshll.u32 %s953_s26, 4  ;;  %s886_s25 = int_to_ptr.vmem [resolvable:$false] %s885_s25 }
 0x195   : > { %s887_s19 = scalar_lea.vmem %s886_s25, 512  ;;  %p888_p0 = scmp.lt.s32.totalorder %s746_s12, %s886_s25 }
 0x196   : > { %p884_p13 = pneg %p883_p12  ;;  %p889_p1 = scmp.lt.s32.totalorder %s887_s19, %s881_s10 }
 0x198   : > { %p890_p2 = por %p889_p1, %p888_p0 }
 0x19a   : > { %p891_p3 = pnand %p890_p2, %p884_p13 }
 0x1e5   : > { %v629_v6 = vpop.permute.xlu0 %628  ;;  %v637_v7 = vpop.permute.xlu1 %636 }
 0x1e9   : > { %v621_v8 = vpop.permute.xlu0 %620  ;;  %v639_v10 = vpop.permute.xlu1 %638 }
 0x1ea   : > { %v640_v12 = vsel %vm413_vm8, %v637_v7, %v639_v10  ;;  %v641_v14 = vsel %vm413_vm8, %v639_v10, %v637_v7 }
 0x1eb   : > { %v643_v15 = vmul.f32 %v641_v14, %v1161_v48  ;;  %v642_v16 = vmul.f32 %v640_v12, %v1154_v45 }
 0x1ed   : > { %v613_v17 = vpop.permute.xlu0 %612  ;;  %669 = vmatprep.subr.mxu1 %v643_v15  ;;  %v631_v19 = vpop.permute.xlu1 %630 }
 0x1ee   : > { %v632_v20 = vsel %vm391_vm4, %v629_v6, %v631_v19  ;;  %v633_v21 = vsel %vm391_vm4, %v631_v19, %v629_v6  ;;  %670 = vmatpush1.msra.mxu1 %v642_v16 }
 0x1ef   : > { %v634_v31 = vmul.f32 %v632_v20, %v1124_v29  ;;  %v635_v33 = vmul.f32 %v633_v21, %v1127_v30 }
 0x1f1   : > { %671 = vmatprep.subr.mxu1 %v635_v33  ;;  %v623_v34 = vpop.permute.xlu1 %622  ;;  %v605_v35 = vpop.permute.xlu0 %604 }
 0x1f2   : > { %v624_v48 = vsel %vm369_vm0, %v621_v8, %v623_v34  ;;  %v625_v45 = vsel %vm369_vm0, %v623_v34, %v621_v8  ;;  %672 = vmatpush1.msra.mxu1 %v634_v31  ;;  %vm651_vm0 = vcmask 588800  }
 0x1f3   : > { %v626_v36 = vmul.f32 %v624_v48, %v1093_v18  ;;  %v627_v38 = vmul.f32 %v625_v45, %v1102_v22 }
 0x1f5   : > { %673 = vmatprep.subr.mxu1 %v627_v38  ;;  %v615_v39 = vpop.permute.xlu1 %614  ;;  %v597_v42 = vpop.permute.xlu0 %596 }
 0x1f6   : > { %v616_v29 = vsel %vm347_vm2, %v613_v17, %v615_v39  ;;  %v617_v30 = vsel %vm347_vm2, %v615_v39, %v613_v17  ;;  %674 = vmatpush1.msra.mxu1 %v626_v36 }
 0x1f7   : > { %v618_v40 = vmul.f32 %v616_v29, %v1111_v25  ;;  %v619_v41 = vmul.f32 %v617_v30, %v1114_v26 }
 0x1f9   : > { %675 = vmatprep.subr.mxu1 %v619_v41  ;;  %v607_v11 = vpop.permute.xlu1 %606  ;;  %v589_v49 = vpop.permute.xlu0 %588 }
 0x1fa   : > { %v608_v18 = vsel %vm325_vm3, %v605_v35, %v607_v11  ;;  %v609_v22 = vsel %vm325_vm3, %v607_v11, %v605_v35  ;;  %676 = vmatpush1.msra.mxu1 %v618_v40 }
 0x1fb   : > { %v610_v43 = vmul.f32 %v609_v22, %v1117_v27  ;;  %v611_v46 = vmul.f32 %v608_v18, %v1120_v28  ;;  %677 = vmatprep.subr.mxu1 %v579_v63 }
 0x1fc   : > { %678 = vmatpush1.msra.mxu1 %v578_v3 }
 0x1fd   : > { %679 = vmatprep.subr.mxu1 %v611_v46  ;;  %v599_v25 = vpop.permute.xlu1 %598  ;;  %v581_v13 = vpop.permute.xlu0 %580 }
 0x1fe   : > { %v600_v26 = vsel %vm303_vm1, %v597_v42, %v599_v25  ;;  %v601_v47 = vsel %vm303_vm1, %v599_v25, %v597_v42  ;;  %680 = vmatpush1.msra.mxu1 %v610_v43 }
 0x1ff   : > { %v602_v0 = vmul.f32 %v601_v47, %v1105_v23  ;;  %v603_v32 = vmul.f32 %v600_v26, %v1108_v24 }
 0x201   : > { %681 = vmatprep.subr.mxu1 %v603_v32  ;;  %v591_v27 = vpop.permute.xlu1 %590 }
 0x202   : > { %v592_v28 = vsel %vm281_vm11, %v589_v49, %v591_v27  ;;  %v593_v50 = vsel %vm281_vm11, %v591_v27, %v589_v49  ;;  %682 = vmatpush1.msra.mxu1 %v602_v0 }
 0x203   : > { %v594_v51 = vmul.f32 %v593_v50, %v1181_v1  ;;  %v595_v52 = vmul.f32 %v592_v28, %v1184_v2  ;;  %v644_v1 = vld [vmem:[%s1344_s4] sm:$0xff] }
 0x205   : > { %683 = vmatprep.subr.mxu1 %v595_v52  ;;  %v583_v53 = vpop.permute.xlu1 %582 }
 0x206   : > { %v584_v23 = vsel %vm260_vm13, %v581_v13, %v583_v53  ;;  %v585_v24 = vsel %vm260_vm13, %v583_v53, %v581_v13  ;;  %684 = vmatpush1.msra.mxu1 %v594_v51 }
 0x207   : > { %v586_v54 = vmul.f32 %v585_v24, %v1205_v37  ;;  %v587_v55 = vmul.f32 %v584_v23, %v1221_v44 }
 0x209   : > { %685 = vmatprep.subr.mxu1 %v587_v55 }
 0x20a   : > { %686 = vmatpush1.msra.mxu1 %v586_v54  ;;  %v649_v2 = vpop.permute.xlu0 %648 }
 0x20b   : > { %821 = vmatmul.mubr.msk.f32.vlgmr.msra.gmra.mxu1 %vm651_vm0, %v644_v1 }
 0x2cb   : > { %v721_v56 = vpop.f32.mrf.mxu1 }
 0x2cc   : > { %v722_v9 = vadd.f32 %v721_v56, %v649_v2 }
 0x2cd   : > { %v723_v57 = vpop.f32.mrf.mxu1 }
 0x2ce   : > { %v726_v37 = vmax.f32 %v722_v9, 0.0  ;;  %v724_v44 = vadd.f32 %v723_v57, %v649_v2 }
 0x2d0   : > { %728 = vst [vmem:[%s244_s20] sm:$0xff] %v726_v37  ;;  %v727_v58 = vmax.f32 %v724_v44, 0.0 }
 0x2d2   : > { %729 = vst [vmem:[%s244_s20 + $0x8] sm:$0xff] %v727_v58 }
 0x2d3   : > { %894 = shalt.err (!%p891_p3)
}
 0x2d4   : > { %s895_s11 = scalar_lea.hbm %s743_s29, 256  ;;  %s899_s16 = scalar_lea.hbm %s1346_s6, 512 }
 0x2d5   : > { %p896_p4 = scmp.ne.s32.totalorder %s743_s29, %s895_s11  ;;  %p900_p9 = scmp.lt.s32.totalorder %s743_s29, %s1346_s6 }
 0x2d6   : > { %p901_p10 = scmp.lt.s32.totalorder %s899_s16, %s895_s11 }
 0x2d7   : > { %p897_p7 = pnand %p896_p4, %p1027_p5 }
 0x2d8   : > { %p902_p11 = por %p901_p10, %p900_p9 }
 0x2d9   : > { %p898_p8 = pneg %p897_p7 }
 0x2db   : > { %p903_p12 = pnand %p902_p11, %p898_p8 }
 0x2dd   : > { %906 = shalt.err (!%p903_p12)
}
 0x2de   : > { %829 = dma.vmem_to_hbm [thread:$0]  (%p1027_p5), %s746_s12, 256, %s743_s29, %s731_s9  }
 0x2df PF: > { %p835_p13 = scmp.ge.s32.totalorder %s941_s24, 2  ;;  %s757_s20 = sand.u32 1, %s929_s21  }
 0x2e0   : > { %s758_s13 = scalar_lea.sflag [#allocation3], %s757_s20 }
 0x2e1   : > { %p832_p0 = pnand %p835_p13, %p1031_p6 }
 0x2e3   : > { %p833_p1 = pneg %p832_p0 }
 0x2e5   : > { %924 = dma.done.wait (%p833_p1), %s758_s13, 256  }
 0x2e6   : > { %926 = vsyncadd (%p833_p1), %s758_s13, 4294967040  ;;  %p16_p2 = scmp.ge.s32.totalorder %s1014_s27, 4   ;;  %s1352_s21 = smov %s933_s22 }
 0x2e7   : > { %s1353_s22 = smov %s937_s23  ;;  %s1354_s23 = smov %s1025_s30 }
 0x2e8   : > { %s1355_s24 = smov %s1014_s27  ;;  %18 = sbr.rel (!%p16_p2) target bundleno = 3 (0x3), region = 86 }
 0x2ed   :  { %763 = vsyncpa [#allocation3], 1 }
 0x2ee   :  { %765 = vsyncpa [#allocation3 + $0x1], 1 }

</bundles_post_ra>
